<compile_context>
chip_gen: v7x
topology: tpu7x:2x2x1
jax: 0.10.0
libtpu: 0.0.40
codegen_flags: <defaults>
</compile_context>

<pallas_src>
import math
import numpy as np

import jax
import jax.numpy as jnp
from jax.experimental import pallas as pl
from jax.experimental.pallas import tpu as pltpu


def _round_up(x, m):
    return ((x + m - 1) // m) * m


# ---------------------------------------------------------------------------
# tiny-matrix determinant on lists-of-lists of (K,TB) arrays (unrolled, D<=3-ish)
# ---------------------------------------------------------------------------
def _det_of(mat):
    n = len(mat)
    if n == 0:
        return 1.0
    if n == 1:
        return mat[0][0]
    if n == 2:
        return mat[0][0] * mat[1][1] - mat[0][1] * mat[1][0]
    res = None
    for j in range(n):
        minor = [row[:j] + row[j + 1:] for row in mat[1:]]
        term = mat[0][j] * _det_of(minor)
        if j % 2 == 1:
            term = -term
        res = term if res is None else res + term
    return res


# ---------------------------------------------------------------------------
# kernel factory (static hyper-parameters closed over)
# ---------------------------------------------------------------------------
def _make_loss_kernel(name, D, neg_weight, min_logprob):
    LOG2PI = float(np.log(2.0 * np.pi))
    f32 = jnp.float32

    def kernel(mc_ref, target_ref, weights_ref, label_ref, out_ref):
        # mc_ref     : (D + D*D, K, TB)  rows [0,D) = means, rows [D,..) = covs (row-major)
        # target_ref : (D, 1, TB)
        # weights_ref: (K, TB)
        # label_ref  : (1, TB)
        # out_ref    : (3, TB)  per-sample partials (mean over B done in the wrapper)

        # diff[i] : (K, TB)  (target broadcast over mixture components)
        diff = [target_ref[i].astype(f32) - mc_ref[i].astype(f32) for i in range(D)]

        # symmetric covariance: load only the upper triangle, alias the rest.
        cov = [[None] * D for _ in range(D)]
        for i in range(D):
            for j in range(i, D):
                cij = mc_ref[D + i * D + j].astype(f32)
                cov[i][j] = cij
                cov[j][i] = cij  # GMM covariances are symmetric

        # cofactor matrix (symmetric since cov is symmetric) => adj(cov) == cof
        cof = [[None] * D for _ in range(D)]
        for i in range(D):
            for j in range(i, D):
                minor = [[cov[r][c] for c in range(D) if c != j]
                         for r in range(D) if r != i]
                cij = _det_of(minor)
                if (i + j) % 2 == 1:
                    cij = -cij
                cof[i][j] = cij
                cof[j][i] = cij

        # det = <first row of cov, first row of cofactors>
        det = None
        for j in range(D):
            t = cov[0][j] * cof[0][j]
            det = t if det is None else det + t

        # quadratic form diff^T adj(cov) diff, folded via symmetry
        quad = None
        for i in range(D):
            t = cof[i][i] * (diff[i] * diff[i])
            quad = t if quad is None else quad + t
        cross = None
        for i in range(D):
            for j in range(i + 1, D):
                t = cof[i][j] * (diff[i] * diff[j])
                cross = t if cross is None else cross + t
        if cross is not None:
            quad = quad + 2.0 * cross

        inv_det = pl.reciprocal(det, approx=False)      # EUP
        mahalanobis = quad * inv_det                    # (K, TB)
        log_det = jnp.log(det)                          # (K, TB), NaN for non-PD (like torch.logdet)

        log_prob_k = (-0.5 * mahalanobis
                      - 0.5 * log_det
                      - 0.5 * D * LOG2PI)               # (K, TB)

        weights = weights_ref[...].astype(f32)          # (K, TB)
        label = label_ref[...].astype(f32)              # (1, TB)
        log_w = jnp.log(weights + 1e-6)                 # hoisted, reused below

        if name in ("mle", "ce"):
            lp = log_prob_k + log_w                                   # (K, TB)
            m = jnp.max(lp, axis=0, keepdims=True)                    # (1, TB) sublane reduce
            lse = jnp.log(jnp.sum(jnp.exp(lp - m), axis=0,
                                  keepdims=True)) + m                 # (1, TB)

        if name in ("mle", "mle_max"):
            if name == "mle":
                log_prob = lse                                        # (1, TB)
            else:
                log_prob = jnp.max(log_prob_k, axis=0, keepdims=True)

            if min_logprob < 0.0:
                log_prob = jnp.where(
                    (label == -1.0) & (log_prob < min_logprob),
                    jnp.float32(min_logprob), log_prob)

            lab = jnp.where(label == -1.0, jnp.float32(-neg_weight), label)

            row0 = log_prob * lab                                      # (1, TB)
            row1 = jnp.sum(weights * log_w, axis=0, keepdims=True)     # (1, TB)
            row2 = jnp.sum(weights * (0.5 * (D * (1.0 + LOG2PI) + log_det)),
                           axis=0, keepdims=True)                      # (1, TB)
            out_ref[...] = jnp.concatenate([row0, row1, row2], axis=0)

        elif name == "ce":
            # NOTE: the original torch _ce_loss leaves mahalanobis un-squeezed,
            # which only broadcasts by accident; we implement the evident intent.
            pdf = jnp.exp(lse)                                         # (1, TB)
            success_rate = pl.reciprocal(1.0 + jnp.exp(-pdf), approx=False)
            lab = (label + jnp.abs(label)) * 0.5
            ce = (jnp.log(success_rate + 1e-6) * lab
                  + jnp.log(1.0 - success_rate + 1e-6) * (1.0 - lab))  # (1, TB)
            zeros = jnp.zeros_like(ce)
            out_ref[...] = jnp.concatenate([ce, zeros, zeros], axis=0)
        else:
            raise ValueError(f"Unknown loss name: {name}")

    return kernel


# ---------------------------------------------------------------------------
# module-like wrapper
# ---------------------------------------------------------------------------
class PallasLoss:
    """Pallas TPU port of n2m Loss (no learnable parameters)."""

    def __init__(self, config):
        self.name = config["name"]
        self.neg_weight = float(config.get("neg_weight", 1.0))
        self.lam_weight = float(config.get("lam_weight", 0.0))
        self.lam_dist = float(config.get("lam_dist", 0.0))
        self.min_logprob = float(config.get("min_logprob", 0.0))

    def __call__(self, means, covs, weights, target_point, label):
        B, K, D = means.shape
        DD = D + D * D

        # --- relayout glue: one combined means+covs slab, kept in input dtype ---
        # TODO(synk): if the producing model emits (..., K, B) layouts directly,
        # this transpose disappears entirely.
        mc = jnp.concatenate([means, covs.reshape(B, K, D * D)], axis=-1)  # (B,K,DD)
        mc_t = jnp.transpose(mc, (2, 1, 0))                                 # (DD, K, B)
        target_t = jnp.transpose(target_point, (1, 0))[:, None, :]          # (D, 1, B)
        weights_t = jnp.transpose(weights, (1, 0))                          # (K, B)
        label_t = jnp.reshape(label, (1, B))                                # (1, B)

        # --- lane tiling over B ---
        TB = min(512, _round_up(B, 128))
        B_pad = _round_up(B, TB)
        pad = B_pad - B
        if pad:
            mc_t = jnp.pad(mc_t, ((0, 0), (0, 0), (0, pad)))
            target_t = jnp.pad(target_t, ((0, 0), (0, 0), (0, pad)))
            weights_t = jnp.pad(weights_t, ((0, 0), (0, pad)))
            label_t = jnp.pad(label_t, ((0, 0), (0, pad)))
        nb = B_pad // TB

        kernel = _make_loss_kernel(self.name, D, self.neg_weight, self.min_logprob)

        grid_spec = pltpu.PrefetchScalarGridSpec(
            num_scalar_prefetch=0,
            grid=(nb,),
            in_specs=[
                pl.BlockSpec((DD, K, TB), lambda i: (0, 0, i)),
                pl.BlockSpec((D, 1, TB), lambda i: (0, 0, i)),
                pl.BlockSpec((K, TB), lambda i: (0, i)),
                pl.BlockSpec((1, TB), lambda i: (0, i)),
            ],
            out_specs=pl.BlockSpec((3, TB), lambda i: (0, i)),
        )

        partial = pl.pallas_call(
            kernel,
            out_shape=jax.ShapeDtypeStruct((3, B_pad), jnp.float32),
            grid_spec=grid_spec,
            compiler_params=pltpu.CompilerParams(
                dimension_semantics=("parallel",),
                vmem_limit_bytes=32 * 1024 * 1024),
        )(mc_t, target_t, weights_t, label_t)

        valid = partial[:, :B]  # drop lane padding; mean over the true B only
        if self.name in ("mle", "mle_max"):
            # loss = -mean(logp*lab) - lam_w*(-mean(row1)) - lam_d*(-mean(row2))
            return (-jnp.mean(valid[0])
                    + self.lam_weight * jnp.mean(valid[1])
                    + self.lam_dist * jnp.mean(valid[2]))
        elif self.name == "ce":
            return -jnp.mean(valid[0])
        else:
            raise ValueError(f"Unknown loss name: {self.name}")


# ---------------------------------------------------------------------------
# pure-JAX reference (mirrors the torch code)
# ---------------------------------------------------------------------------
def ref_loss(name, means, covs, weights, target, label,
             neg_weight, lam_weight, lam_dist, min_logprob):
    B, K, D = means.shape
    diff = (target[:, None, :] - means).astype(jnp.float32)
    inv = jnp.linalg.inv(covs).astype(jnp.float32)
    mah = jnp.einsum("bki,bkij,bkj->bk", diff, inv, diff)
    log_det = jnp.log(jnp.linalg.det(covs))
    lp_comp = -0.5 * mah - 0.5 * log_det - 0.5 * D * np.log(2 * np.pi)
    labelf = label.astype(jnp.float32)

    if name in ("mle", "ce"):
        lp = lp_comp + jnp.log(weights + 1e-6)
        m = jnp.max(lp, axis=1, keepdims=True)
        lse = jax.scipy.special.logsumexp(lp - m, axis=1) + m[:, 0]

    if name in ("mle", "mle_max"):
        logp = lse if name == "mle" else jnp.max(lp_comp, axis=1)
        if min_logprob < 0.0:
            logp = jnp.where((labelf == -1) & (logp < min_logprob),
                             min_logprob, logp)
        lab = jnp.where(labelf == -1, -neg_weight, labelf)
        ew = -jnp.mean(jnp.sum(weights * jnp.log(weights + 1e-6), axis=-1))
        ed = -jnp.mean(jnp.sum(
            weights * (0.5 * (D * (1 + math.log(2 * math.pi)) + log_det)),
            axis=-1))
        return -jnp.mean(logp * lab) - lam_weight * ew - lam_dist * ed
    else:
        pdf = jnp.exp(lse)
        sr = jax.nn.sigmoid(pdf)
        lab = (labelf + jnp.abs(labelf)) / 2.0
        return -jnp.mean(jnp.log(sr + 1e-6) * lab
                         + jnp.log(1 - sr + 1e-6) * (1 - lab))


# ---------------------------------------------------------------------------
if __name__ == "__main__":
    def make_inputs(key, B, K, D):
        k1, k2, k3, k4, k5 = jax.random.split(key, 5)
        means = jax.random.normal(k1, (B, K, D), dtype=jnp.float32)
        A = 0.3 * jax.random.normal(k2, (B, K, D, D), dtype=jnp.float32)
        covs = jnp.einsum("bkij,bklj->bkil", A, A) + 0.5 * jnp.eye(D, dtype=jnp.float32)
        weights = jax.nn.softmax(jax.random.normal(k3, (B, K), dtype=jnp.float32), axis=-1)
        target_point = jax.random.normal(k4, (B, D), dtype=jnp.float32)
        label = jnp.where(jax.random.uniform(k5, (B,)) < 0.5, -1.0, 1.0).astype(jnp.float32)
        return means, covs, weights, target_point, label

    cfg_common = dict(neg_weight=2.0, lam_weight=0.1, lam_dist=0.05, min_logprob=-5.0)
    key = jax.random.PRNGKey(0)
    k_a, k_b = jax.random.split(key)

    cases = [
        make_inputs(k_a, 4, 8, 3),     # single tile, D=3
        make_inputs(k_b, 640, 5, 2),   # multi-tile grid (TB=512, B_pad=1024), D=2, K!=8
    ]

    ok = True
    for means, covs, weights, target_point, label in cases:
        for name in ("mle", "mle_max", "ce"):
            cfg = dict(name=name, **cfg_common)
            loss_mod = PallasLoss(cfg)
            out = jax.block_until_ready(
                loss_mod(means, covs, weights, target_point, label))
            ref = jax.block_until_ready(ref_loss(
                name, means, covs, weights, target_point, label,
                cfg_common["neg_weight"], cfg_common["lam_weight"],
                cfg_common["lam_dist"], cfg_common["min_logprob"]))
            if not np.allclose(np.asarray(out), np.asarray(ref), rtol=2e-4, atol=1e-5):
                ok = False
                print(f"mismatch for {name} B={means.shape[0]}: pallas={out} ref={ref}")

    if ok:
        print("KERNEL_OK")
</pallas_src>

<mosaic_0001>
module attributes {stable_mosaic.version = 11 : i64} {
  func.func @kernel(%arg0: i32, %arg1: memref<12x8x128xf32, #tpu.memory_space<vmem>>, %arg2: memref<3x1x128xf32, #tpu.memory_space<vmem>>, %arg3: memref<8x128xf32, #tpu.memory_space<vmem>>, %arg4: memref<1x128xf32, #tpu.memory_space<vmem>>, %arg5: memref<3x128xf32, #tpu.memory_space<vmem>>) attributes {dimension_semantics = [#tpu.dimension_semantics<parallel>], iteration_bounds = array<i64: 1>, scalar_prefetch = 0 : i64, scratch_operands = 0 : i64, tpu.core_type = #tpu.core_type<tc>, window_params = [{transform_indices = @transform_0, window_bounds = array<i64: 12, 8, 128>}, {transform_indices = @transform_1, window_bounds = array<i64: 3, 1, 128>}, {transform_indices = @transform_2, window_bounds = array<i64: 8, 128>}, {transform_indices = @transform_3, window_bounds = array<i64: 1, 128>}, {transform_indices = @transform_4, window_bounds = array<i64: 3, 128>}]} {
    %c0 = arith.constant 0 : index
    %c0_0 = arith.constant 0 : index
    %c0_1 = arith.constant 0 : index
    %0 = vector.load %arg2[%c0, %c0_0, %c0_1] : memref<3x1x128xf32, #tpu.memory_space<vmem>>, vector<1x1x128xf32>
    %1 = vector.shape_cast %0 : vector<1x1x128xf32> to vector<1x128xf32>
    %c0_2 = arith.constant 0 : index
    %c0_3 = arith.constant 0 : index
    %c0_4 = arith.constant 0 : index
    %2 = vector.load %arg1[%c0_2, %c0_3, %c0_4] : memref<12x8x128xf32, #tpu.memory_space<vmem>>, vector<1x8x128xf32>
    %3 = vector.shape_cast %2 : vector<1x8x128xf32> to vector<8x128xf32>
    %4 = vector.broadcast %1 : vector<1x128xf32> to vector<8x128xf32>
    %5 = arith.subf %4, %3 : vector<8x128xf32>
    %c1 = arith.constant 1 : index
    %c0_5 = arith.constant 0 : index
    %c0_6 = arith.constant 0 : index
    %6 = vector.load %arg2[%c1, %c0_5, %c0_6] : memref<3x1x128xf32, #tpu.memory_space<vmem>>, vector<1x1x128xf32>
    %7 = vector.shape_cast %6 : vector<1x1x128xf32> to vector<1x128xf32>
    %c1_7 = arith.constant 1 : index
    %c0_8 = arith.constant 0 : index
    %c0_9 = arith.constant 0 : index
    %8 = vector.load %arg1[%c1_7, %c0_8, %c0_9] : memref<12x8x128xf32, #tpu.memory_space<vmem>>, vector<1x8x128xf32>
    %9 = vector.shape_cast %8 : vector<1x8x128xf32> to vector<8x128xf32>
    %10 = vector.broadcast %7 : vector<1x128xf32> to vector<8x128xf32>
    %11 = arith.subf %10, %9 : vector<8x128xf32>
    %c2 = arith.constant 2 : index
    %c0_10 = arith.constant 0 : index
    %c0_11 = arith.constant 0 : index
    %12 = vector.load %arg2[%c2, %c0_10, %c0_11] : memref<3x1x128xf32, #tpu.memory_space<vmem>>, vector<1x1x128xf32>
    %13 = vector.shape_cast %12 : vector<1x1x128xf32> to vector<1x128xf32>
    %c2_12 = arith.constant 2 : index
    %c0_13 = arith.constant 0 : index
    %c0_14 = arith.constant 0 : index
    %14 = vector.load %arg1[%c2_12, %c0_13, %c0_14] : memref<12x8x128xf32, #tpu.memory_space<vmem>>, vector<1x8x128xf32>
    %15 = vector.shape_cast %14 : vector<1x8x128xf32> to vector<8x128xf32>
    %16 = vector.broadcast %13 : vector<1x128xf32> to vector<8x128xf32>
    %17 = arith.subf %16, %15 : vector<8x128xf32>
    %c3 = arith.constant 3 : index
    %c0_15 = arith.constant 0 : index
    %c0_16 = arith.constant 0 : index
    %18 = vector.load %arg1[%c3, %c0_15, %c0_16] : memref<12x8x128xf32, #tpu.memory_space<vmem>>, vector<1x8x128xf32>
    %19 = vector.shape_cast %18 : vector<1x8x128xf32> to vector<8x128xf32>
    %c4 = arith.constant 4 : index
    %c0_17 = arith.constant 0 : index
    %c0_18 = arith.constant 0 : index
    %20 = vector.load %arg1[%c4, %c0_17, %c0_18] : memref<12x8x128xf32, #tpu.memory_space<vmem>>, vector<1x8x128xf32>
    %21 = vector.shape_cast %20 : vector<1x8x128xf32> to vector<8x128xf32>
    %c5 = arith.constant 5 : index
    %c0_19 = arith.constant 0 : index
    %c0_20 = arith.constant 0 : index
    %22 = vector.load %arg1[%c5, %c0_19, %c0_20] : memref<12x8x128xf32, #tpu.memory_space<vmem>>, vector<1x8x128xf32>
    %23 = vector.shape_cast %22 : vector<1x8x128xf32> to vector<8x128xf32>
    %c7 = arith.constant 7 : index
    %c0_21 = arith.constant 0 : index
    %c0_22 = arith.constant 0 : index
    %24 = vector.load %arg1[%c7, %c0_21, %c0_22] : memref<12x8x128xf32, #tpu.memory_space<vmem>>, vector<1x8x128xf32>
    %25 = vector.shape_cast %24 : vector<1x8x128xf32> to vector<8x128xf32>
    %c8 = arith.constant 8 : index
    %c0_23 = arith.constant 0 : index
    %c0_24 = arith.constant 0 : index
    %26 = vector.load %arg1[%c8, %c0_23, %c0_24] : memref<12x8x128xf32, #tpu.memory_space<vmem>>, vector<1x8x128xf32>
    %27 = vector.shape_cast %26 : vector<1x8x128xf32> to vector<8x128xf32>
    %c11 = arith.constant 11 : index
    %c0_25 = arith.constant 0 : index
    %c0_26 = arith.constant 0 : index
    %28 = vector.load %arg1[%c11, %c0_25, %c0_26] : memref<12x8x128xf32, #tpu.memory_space<vmem>>, vector<1x8x128xf32>
    %29 = vector.shape_cast %28 : vector<1x8x128xf32> to vector<8x128xf32>
    %30 = arith.mulf %25, %29 : vector<8x128xf32>
    %31 = arith.mulf %27, %27 : vector<8x128xf32>
    %32 = arith.subf %30, %31 : vector<8x128xf32>
    %33 = arith.mulf %21, %29 : vector<8x128xf32>
    %34 = arith.mulf %27, %23 : vector<8x128xf32>
    %35 = arith.subf %33, %34 : vector<8x128xf32>
    %cst = arith.constant 0.000000e+00 : f32
    %36 = vector.broadcast %cst : f32 to vector<8x128xf32>
    %37 = arith.subf %36, %35 : vector<8x128xf32>
    %38 = arith.mulf %21, %27 : vector<8x128xf32>
    %39 = arith.mulf %25, %23 : vector<8x128xf32>
    %40 = arith.subf %38, %39 : vector<8x128xf32>
    %41 = arith.mulf %19, %29 : vector<8x128xf32>
    %42 = arith.mulf %23, %23 : vector<8x128xf32>
    %43 = arith.subf %41, %42 : vector<8x128xf32>
    %44 = arith.mulf %19, %27 : vector<8x128xf32>
    %45 = arith.mulf %21, %23 : vector<8x128xf32>
    %46 = arith.subf %44, %45 : vector<8x128xf32>
    %cst_27 = arith.constant 0.000000e+00 : f32
    %47 = vector.broadcast %cst_27 : f32 to vector<8x128xf32>
    %48 = arith.subf %47, %46 : vector<8x128xf32>
    %49 = arith.mulf %19, %25 : vector<8x128xf32>
    %50 = arith.mulf %21, %21 : vector<8x128xf32>
    %51 = arith.subf %49, %50 : vector<8x128xf32>
    %52 = arith.mulf %19, %32 : vector<8x128xf32>
    %53 = arith.mulf %21, %37 : vector<8x128xf32>
    %54 = arith.addf %52, %53 : vector<8x128xf32>
    %55 = arith.mulf %23, %40 : vector<8x128xf32>
    %56 = arith.addf %54, %55 : vector<8x128xf32>
    %57 = arith.mulf %5, %5 : vector<8x128xf32>
    %58 = arith.mulf %32, %57 : vector<8x128xf32>
    %59 = arith.mulf %11, %11 : vector<8x128xf32>
    %60 = arith.mulf %43, %59 : vector<8x128xf32>
    %61 = arith.addf %58, %60 : vector<8x128xf32>
    %62 = arith.mulf %17, %17 : vector<8x128xf32>
    %63 = arith.mulf %51, %62 : vector<8x128xf32>
    %64 = arith.addf %61, %63 : vector<8x128xf32>
    %65 = arith.mulf %5, %11 : vector<8x128xf32>
    %66 = arith.mulf %37, %65 : vector<8x128xf32>
    %67 = arith.mulf %5, %17 : vector<8x128xf32>
    %68 = arith.mulf %40, %67 : vector<8x128xf32>
    %69 = arith.addf %66, %68 : vector<8x128xf32>
    %70 = arith.mulf %11, %17 : vector<8x128xf32>
    %71 = arith.mulf %48, %70 : vector<8x128xf32>
    %72 = arith.addf %69, %71 : vector<8x128xf32>
    %cst_28 = arith.constant 2.000000e+00 : f32
    %73 = vector.broadcast %cst_28 : f32 to vector<8x128xf32>
    %74 = arith.mulf %73, %72 : vector<8x128xf32>
    %75 = arith.addf %64, %74 : vector<8x128xf32>
    %76 = tpu.reciprocal %56 : vector<8x128xf32> -> vector<8x128xf32>
    %77 = arith.mulf %75, %76 : vector<8x128xf32>
    %78 = math.log %56 : vector<8x128xf32>
    %cst_29 = arith.constant -5.000000e-01 : f32
    %79 = vector.broadcast %cst_29 : f32 to vector<8x128xf32>
    %80 = arith.mulf %79, %77 : vector<8x128xf32>
    %cst_30 = arith.constant 5.000000e-01 : f32
    %81 = vector.broadcast %cst_30 : f32 to vector<8x128xf32>
    %82 = arith.mulf %81, %78 : vector<8x128xf32>
    %83 = arith.subf %80, %82 : vector<8x128xf32>
    %cst_31 = arith.constant 2.75681567 : f32
    %84 = vector.broadcast %cst_31 : f32 to vector<8x128xf32>
    %85 = arith.subf %83, %84 : vector<8x128xf32>
    %c0_32 = arith.constant 0 : index
    %c0_33 = arith.constant 0 : index
    %86 = vector.load %arg3[%c0_32, %c0_33] : memref<8x128xf32, #tpu.memory_space<vmem>>, vector<8x128xf32>
    %c0_34 = arith.constant 0 : index
    %c0_35 = arith.constant 0 : index
    %87 = vector.load %arg4[%c0_34, %c0_35] : memref<1x128xf32, #tpu.memory_space<vmem>>, vector<1x128xf32>
    %cst_36 = arith.constant 9.99999997E-7 : f32
    %88 = vector.broadcast %cst_36 : f32 to vector<8x128xf32>
    %89 = arith.addf %86, %88 : vector<8x128xf32>
    %90 = math.log %89 : vector<8x128xf32>
    %91 = arith.addf %85, %90 : vector<8x128xf32>
    %cst_37 = arith.constant dense<0xFF800000> : vector<128xf32>
    %92 = vector.multi_reduction <maximumf>, %91, %cst_37 [0] : vector<8x128xf32> to vector<128xf32>
    %93 = vector.shape_cast %92 : vector<128xf32> to vector<1x128xf32>
    %94 = vector.broadcast %93 : vector<1x128xf32> to vector<8x128xf32>
    %95 = arith.subf %91, %94 : vector<8x128xf32>
    %96 = math.exp %95 : vector<8x128xf32>
    %cst_38 = arith.constant dense<0.000000e+00> : vector<128xf32>
    %97 = vector.multi_reduction <add>, %96, %cst_38 [0] : vector<8x128xf32> to vector<128xf32>
    %98 = vector.shape_cast %97 : vector<128xf32> to vector<1x128xf32>
    %99 = math.log %98 : vector<1x128xf32>
    %100 = arith.addf %99, %93 : vector<1x128xf32>
    %cst_39 = arith.constant -1.000000e+00 : f32
    %101 = vector.broadcast %cst_39 : f32 to vector<1x128xf32>
    %102 = arith.cmpf oeq, %87, %101 : vector<1x128xf32>
    %cst_40 = arith.constant -5.000000e+00 : f32
    %103 = vector.broadcast %cst_40 : f32 to vector<1x128xf32>
    %104 = arith.cmpf olt, %100, %103 : vector<1x128xf32>
    %105 = arith.andi %102, %104 : vector<1x128xi1>
    %cst_41 = arith.constant -5.000000e+00 : f32
    %106 = vector.broadcast %cst_41 : f32 to vector<1x128xf32>
    %107 = arith.select %105, %106, %100 : vector<1x128xi1>, vector<1x128xf32>
    %cst_42 = arith.constant -1.000000e+00 : f32
    %108 = vector.broadcast %cst_42 : f32 to vector<1x128xf32>
    %109 = arith.cmpf oeq, %87, %108 : vector<1x128xf32>
    %cst_43 = arith.constant -2.000000e+00 : f32
    %110 = vector.broadcast %cst_43 : f32 to vector<1x128xf32>
    %111 = arith.select %109, %110, %87 : vector<1x128xi1>, vector<1x128xf32>
    %112 = arith.mulf %107, %111 : vector<1x128xf32>
    %113 = arith.mulf %86, %90 : vector<8x128xf32>
    %cst_44 = arith.constant dense<0.000000e+00> : vector<128xf32>
    %114 = vector.multi_reduction <add>, %113, %cst_44 [0] : vector<8x128xf32> to vector<128xf32>
    %115 = vector.shape_cast %114 : vector<128xf32> to vector<1x128xf32>
    %cst_45 = arith.constant 8.51363086 : f32
    %116 = vector.broadcast %cst_45 : f32 to vector<8x128xf32>
    %117 = arith.addf %116, %78 : vector<8x128xf32>
    %cst_46 = arith.constant 5.000000e-01 : f32
    %118 = vector.broadcast %cst_46 : f32 to vector<8x128xf32>
    %119 = arith.mulf %118, %117 : vector<8x128xf32>
    %120 = arith.mulf %86, %119 : vector<8x128xf32>
    %cst_47 = arith.constant dense<0.000000e+00> : vector<128xf32>
    %121 = vector.multi_reduction <add>, %120, %cst_47 [0] : vector<8x128xf32> to vector<128xf32>
    %122 = vector.shape_cast %121 : vector<128xf32> to vector<1x128xf32>
    %123 = tpu.concatenate %112, %115, %122 in 0 : vector<1x128xf32>, vector<1x128xf32>, vector<1x128xf32> -> vector<3x128xf32>
    %c0_48 = arith.constant 0 : index
    %c0_49 = arith.constant 0 : index
    %124 = vector.load %arg5[%c0_48, %c0_49] : memref<3x128xf32, #tpu.memory_space<vmem>>, vector<3x128xf32>
    tpu.vector_store %arg5[%c0_48, %c0_49], %123 {strides = array<i32>} : memref<3x128xf32, #tpu.memory_space<vmem>>, vector<3x128xf32>,
    return
  }
  func.func @transform_0(%arg0: i32) -> (i32, i32, i32) {
    %c0_i32 = arith.constant 0 : i32
    %c0_i32_0 = arith.constant 0 : i32
    %c0_i32_1 = arith.constant 0 : i32
    return %c0_i32, %c0_i32_0, %arg0 : i32, i32, i32
  }
  func.func @transform_1(%arg0: i32) -> (i32, i32, i32) {
    %c0_i32 = arith.constant 0 : i32
    %c0_i32_0 = arith.constant 0 : i32
    %c0_i32_1 = arith.constant 0 : i32
    return %c0_i32, %c0_i32_0, %arg0 : i32, i32, i32
  }
  func.func @transform_2(%arg0: i32) -> (i32, i32) {
    %c0_i32 = arith.constant 0 : i32
    %c0_i32_0 = arith.constant 0 : i32
    return %c0_i32, %arg0 : i32, i32
  }
  func.func @transform_3(%arg0: i32) -> (i32, i32) {
    %c0_i32 = arith.constant 0 : i32
    %c0_i32_0 = arith.constant 0 : i32
    return %c0_i32, %arg0 : i32, i32
  }
  func.func @transform_4(%arg0: i32) -> (i32, i32) {
    %c0_i32 = arith.constant 0 : i32
    %c0_i32_0 = arith.constant 0 : i32
    return %c0_i32, %arg0 : i32, i32
  }
}

</mosaic_0001>

<bundles_post_ra>
// kernel: tpu_custom_call.1
= control target key start
LH: loop header
LB: loop body
LE: loop exit
PB: predicated region body
PF: predicated region fallthrough
CT: control target
= control target key end

     0   :  { %9 = vsyncpa [#allocation3], 0  ;;  %s376_s0 = inlined_call_operand.hbm [shape: f32[12,8,128], index: 0, kind: input, shape index: {}]   ;;  %s377_s1 = inlined_call_operand.vmem [shape: f32[3,1,128], index: 1, kind: input, shape index: {}]   ;;  %s378_s2 = inlined_call_operand.hbm [shape: f32[8,128], index: 2, kind: input, shape index: {}]   ;;  %s379_s3 = inlined_call_operand.vmem [shape: f32[1,128], index: 3, kind: input, shape index: {}]   ;;  %s380_s4 = inlined_call_operand.hbm [shape: f32[3,128], index: 4, kind: output, shape index: {}]  }
   0x1   :  { %10 = vsyncpa [#allocation6], 0 }
   0x2   :  { %11 = vsyncpa [#allocation4], 0  ;;  %s298_s15 = smov [#allocation2]   ;;  %s226_s19 = scalar_lea.hbm %s376_s0, 1536 }
   0x3   :  { %s17_s16 = sshll.u32 %s298_s15, 4  ;;  %p227_p0 = scmp.ne.s32.totalorder %s376_s0, %s226_s19  ;;  %s18_s16 = int_to_ptr.vmem [resolvable:$true] %s17_s16 }
   0x4   :  { %p230_p1 = scmp.lt.u32.totalorder %s226_s19, %s376_s0 }
   0x6   :  { %p232_p2 = pnand %p230_p1, %p227_p0 }
   0x8   :  { %235 = shalt.err (!%p232_p2)
}
   0x9   :  { %s236_s24 = scalar_lea.vmem %s18_s16, 1536  ;;  %p241_p4 = scmp.lt.s32.totalorder %s18_s16, %s18_s16 }
   0xa   :  { %p237_p3 = scmp.ne.s32.totalorder %s18_s16, %s236_s24  ;;  %p242_p5 = scmp.lt.s32.totalorder %s236_s24, %s236_s24 }
   0xc   :  { %p243_p6 = por %p242_p5, %p241_p4 }
   0xe   :  { %p244_p7 = pnand %p243_p6, %p237_p3 }
  0x10   :  { %247 = shalt.err (!%p244_p7)
}
  0x11   :  { %s299_s25 = smov 128   ;;  %s300_s26 = smov 8  }
  0x12   :  { %23 = dma.hbm_to_vmem [thread:$0]  %s376_s0, 1536, %s18_s16, [#allocation3], %s299_s25, %s299_s25, %s300_s26  }
  0x13   :  { %s301_s29 = smov [#allocation5]   ;;  %s248_s7 = scalar_lea.hbm %s378_s2, 128 }
  0x14   :  { %s32_s30 = sshll.u32 %s301_s29, 4  ;;  %p249_p8 = scmp.ne.s32.totalorder %s378_s2, %s248_s7  ;;  %s33_s30 = int_to_ptr.vmem [resolvable:$true] %s32_s30 }
  0x15   :  { %p252_p9 = scmp.lt.u32.totalorder %s248_s7, %s378_s2 }
  0x17   :  { %p254_p10 = pnand %p252_p9, %p249_p8 }
  0x19   :  { %257 = shalt.err (!%p254_p10)
}
  0x1a   :  { %s258_s12 = scalar_lea.vmem %s33_s30, 128  ;;  %p263_p12 = scmp.lt.s32.totalorder %s33_s30, %s33_s30 }
  0x1b   :  { %p259_p11 = scmp.ne.s32.totalorder %s33_s30, %s258_s12  ;;  %p264_p13 = scmp.lt.s32.totalorder %s258_s12, %s258_s12 }
  0x1d   :  { %p265_p0 = por %p264_p13, %p263_p12 }
  0x1f   :  { %p266_p1 = pnand %p265_p0, %p259_p11 }
  0x21   :  { %269 = shalt.err (!%p266_p1)
}
  0x22   :  { %35 = dma.hbm_to_vmem [thread:$0]  %s378_s2, 128, %s33_s30, [#allocation6]  }
  0x23   :  { %292 = dma.done.wait [#allocation3], 1536  }
  0x24   :  { %293 = vsyncadd [#allocation3], 4294965760 }
  0x25   :  { %294 = dma.done.wait [#allocation6], 128  }
  0x26   :  { %295 = vsyncadd [#allocation6], 4294967168  ;;  %v205_v0 = vld [vmem:[%s377_s1] ss:$0 sm:$0xff]  ;;  %v207_v2 = vld [vmem:[%s377_s1 + $0x1] ss:$0 sm:$0xff] }
  0x27   :  { %v45_v1 = vld [vmem:[#allocation2] sm:$0xff]  ;;  %v56_v3 = vld [vmem:[#allocation2 + $0x8] sm:$0xff]  ;;  %v67_v5 = vld [vmem:[#allocation2 + $0x10] sm:$0xff]  ;;  %vm184_vm3 = vcmask 1040384   ;;  %s302_s20 = smov [#allocation7]   ;;  %vm186_vm4 = vcmask 1041408  }
  0x28   :  { %v209_v4 = vld [vmem:[%s377_s1 + $0x2] ss:$0 sm:$0xff]  ;;  %v52_v6 = vsub.f32 %v205_v0, %v45_v1  ;;  %v63_v7 = vsub.f32 %v207_v2, %v56_v3  ;;  %v80_v9 = vld [vmem:[#allocation2 + $0x28] sm:$0xff]  ;;  %v82_v11 = vld [vmem:[#allocation2 + $0x38] sm:$0xff]  ;;  %s195_s21 = sshll.u32 %s302_s20, 4  ;;  %s196_s21 = int_to_ptr.vmem [resolvable:$true] %s195_s21 }
  0x29   :  { %v78_v8 = vld [vmem:[#allocation2 + $0x20] sm:$0xff]  ;;  %v74_v10 = vsub.f32 %v209_v4, %v67_v5  ;;  %v86_v13 = vld [vmem:[#allocation2 + $0x58] sm:$0xff]  ;;  %v98_v14 = vmul.f32 %v80_v9, %v80_v9  ;;  %v95_v23 = vmul.f32 %v82_v11, %v80_v9  ;;  %p275_p3 = scmp.lt.s32.totalorder %s196_s21, %s196_s21 }
  0x2a   :  { %v84_v12 = vld [vmem:[#allocation2 + $0x40] sm:$0xff]  ;;  %v101_v15 = vmul.f32 %v80_v9, %v78_v8  ;;  %v105_v16 = vmul.f32 %v78_v8, %v78_v8  ;;  %v76_v17 = vld [vmem:[#allocation2 + $0x18] sm:$0xff]  ;;  %v87_v18 = vmul.f32 %v86_v13, %v82_v11  ;;  %v90_v20 = vmul.f32 %v86_v13, %v78_v8 }
  0x2b   :  { %v88_v19 = vmul.f32 %v84_v12, %v84_v12  ;;  %v91_v21 = vmul.f32 %v84_v12, %v80_v9  ;;  %v94_v22 = vmul.f32 %v84_v12, %v78_v8  ;;  %v97_v24 = vmul.f32 %v86_v13, %v76_v17  ;;  %v138_v50 = vld [vmem:[#allocation5] sm:$0xff] }
  0x2c   :  { %v100_v25 = vmul.f32 %v84_v12, %v76_v17  ;;  %v104_v28 = vmul.f32 %v82_v11, %v76_v17  ;;  %v112_v29 = vmul.f32 %v52_v6, %v52_v6  ;;  %v114_v33 = vmul.f32 %v63_v7, %v63_v7 }
  0x2d   :  { %v89_v26 = vsub.f32 %v87_v18, %v88_v19  ;;  %v92_v27 = vsub.f32 %v90_v20, %v91_v21  ;;  %v96_v30 = vsub.f32 %v94_v22, %v95_v23  ;;  %v99_v31 = vsub.f32 %v97_v24, %v98_v14 }
  0x2e   :  { %v102_v32 = vsub.f32 %v100_v25, %v101_v15  ;;  %v117_v37 = vmul.f32 %v74_v10, %v74_v10  ;;  %v120_v38 = vmul.f32 %v63_v7, %v52_v6  ;;  %v122_v41 = vmul.f32 %v74_v10, %v52_v6 }
  0x2f   :  { %v93_v34 = vsub.f32 0.0, %v92_v27  ;;  %v107_v35 = vmul.f32 %v89_v26, %v76_v17  ;;  %v110_v40 = vmul.f32 %v96_v30, %v80_v9  ;;  %v125_v42 = vmul.f32 %v74_v10, %v63_v7 }
  0x30   :  { %v103_v36 = vsub.f32 0.0, %v102_v32  ;;  %v106_v43 = vsub.f32 %v104_v28, %v105_v16  ;;  %v113_v44 = vmul.f32 %v112_v29, %v89_v26  ;;  %v115_v45 = vmul.f32 %v114_v33, %v99_v31  ;;  %v139_v33 = vld [vmem:[%s379_s3] sm:$0x1]  ;;  %s270_s3 = scalar_lea.vmem %s196_s21, 64 }
  0x31   :  { %v108_v39 = vmul.f32 %v93_v34, %v78_v8  ;;  %v121_v46 = vmul.f32 %v120_v38, %v93_v34  ;;  %v123_v48 = vmul.f32 %v122_v41, %v96_v30  ;;  %v140_v55 = vadd.f32 1e-06, %v138_v50  ;;  %p271_p2 = scmp.ne.s32.totalorder %s196_s21, %s270_s3  ;;  %p276_p4 = scmp.lt.s32.totalorder %s270_s3, %s270_s3 }
  0x32   :  { %v126_v49 = vmul.f32 %v125_v42, %v103_v36  ;;  %v116_v53 = vadd.f32 %v115_v45, %v113_v44  ;;  %v118_v54 = vmul.f32 %v117_v37, %v106_v43  ;;  %vm162_vm0 = vcmp.eq.f32.partialorder %v139_v33, -1.0 }
  0x33   :  { %v109_v47 = vadd.f32 %v108_v39, %v107_v35  ;;  %v124_v52 = vadd.f32 %v123_v48, %v121_v46  ;;  %p277_p5 = por %p276_p4, %p275_p3 }
  0x34   :  { %v119_v57 = vadd.f32 %v118_v54, %v116_v53 }
  0x35   :  { %v111_v51 = vadd.f32 %v110_v40, %v109_v47  ;;  %v127_v56 = vadd.f32 %v126_v49, %v124_v52  ;;  %v166_v40 = vsel %vm162_vm0, -2.0, %v139_v33  ;;  %p278_p6 = pnand %p277_p5, %p271_p2 }
  0x37   :  { %216 = vrcp.f32 %v111_v51  ;;  %v128_v58 = vmul.f32 2.0, %v127_v56 }
  0x38   :  { %218 = vlog2.f32 %v111_v51 }
  0x39   :  { %220 = vlog2.f32 %v140_v55  ;;  %v129_v59 = vadd.f32 %v128_v58, %v119_v57 }
  0x41   :  { %v217_v60 = vpop.eup %216 }
  0x42   :  { %v219_v61 = vpop.eup %218  ;;  %v131_v62 = vmul.f32 %v217_v60, %v129_v59 }
  0x43   :  { %v133_v63 = vmul.f32 0.6931472, %v219_v61  ;;  %v221_v0 = vpop.eup %220 }
  0x44   :  { %v134_v1 = vmul.f32 -0.5, %v131_v62  ;;  %v142_v4 = vmul.f32 0.6931472, %v221_v0 }
  0x45   :  { %v135_v2 = vmul.f32 0.5, %v133_v63  ;;  %v175_v15 = vadd.f32 8.513631, %v133_v63 }
  0x46   :  { %v168_v21 = vmul.f32 %v142_v4, %v138_v50 }
  0x47   :  { %v136_v3 = vsub.f32 %v134_v1, %v135_v2  ;;  %v176_v18 = vmul.f32 0.5, %v175_v15 }
  0x48   :  { %v169_v25 = vrot.slane %v168_v21, 4 }
  0x49   :  { %v210_v5 = vadd.f32 -2.7568157, %v136_v3  ;;  %v177_v22 = vmul.f32 %v176_v18, %v138_v50 }
  0x4a   :  { %v170_v28 = vadd.f32 %v169_v25, %v168_v21 }
  0x4b   :  { %v143_v6 = vadd.f32 %v210_v5, %v142_v4  ;;  %v178_v26 = vrot.slane %v177_v22, 4 }
  0x4c   :  { %v171_v30 = vrot.slane %v170_v28, 2 }
  0x4d   :  { %v144_v7 = vrot.slane %v143_v6, 4  ;;  %v179_v29 = vadd.f32 %v178_v26, %v177_v22 }
  0x4e   :  { %v172_v32 = vadd.f32 %v171_v30, %v170_v28 }
  0x4f   :  { %v145_v8 = vmax.f32 %v143_v6, %v144_v7  ;;  %v180_v31 = vrot.slane %v179_v29, 2 }
  0x50   :  { %v173_v37 = vrot.slane %v172_v32, 1 }
  0x51   :  { %v146_v9 = vrot.slane %v145_v8, 2  ;;  %v181_v34 = vadd.f32 %v180_v31, %v179_v29 }
  0x52   :  { %v174_v41 = vadd.f32 %v173_v37, %v172_v32 }
  0x53   :  { %v147_v10 = vmax.f32 %v145_v8, %v146_v9  ;;  %v182_v39 = vrot.slane %v181_v34, 1 }
  0x55   :  { %v148_v11 = vrot.slane %v147_v10, 1  ;;  %v183_v43 = vadd.f32 %v182_v39, %v181_v34 }
  0x57   :  { %v149_v12 = vmax.f32 %v147_v10, %v148_v11 }
  0x59   :  { %v150_v13 = vsub.f32 %v143_v6, %v149_v12 }
  0x5b   :  { %v151_v14 = vmul.f32 1.442695, %v150_v13 }
  0x5d   :  { %222 = vpow2.f32 %v151_v14 }
  0x67   :  { %v223_v16 = vpop.eup %222 }
  0x68   :  { %v153_v17 = vrot.slane %v223_v16, 4 }
  0x6a   :  { %v154_v19 = vadd.f32 %v223_v16, %v153_v17 }
  0x6c   :  { %v155_v20 = vrot.slane %v154_v19, 2 }
  0x6e   :  { %v156_v23 = vadd.f32 %v155_v20, %v154_v19 }
  0x70   :  { %v157_v24 = vrot.slane %v156_v23, 1 }
  0x72   :  { %v158_v27 = vadd.f32 %v157_v24, %v156_v23 }
  0x74   :  { %224 = vlog2.f32 %v158_v27 }
  0x7e   :  { %v225_v35 = vpop.eup %224 }
  0x7f   :  { %v160_v36 = vmul.f32 0.6931472, %v225_v35 }
  0x81   :  { %v161_v38 = vadd.f32 %v160_v36, %v149_v12 }
  0x83   :  { %vm163_vm1 = vcmp.lt.f32.partialorder %v161_v38, -5.0 }
  0x84   :  { %vm164_vm2 = vmand %vm162_vm0, %vm163_vm1 }
  0x85   :  { %v165_v42 = vsel %vm164_vm2, -5.0, %v161_v38 }
  0x86   :  { %v167_v44 = vmul.f32 %v166_v40, %v165_v42 }
  0x88   :  { %v185_v45 = vsel %vm184_vm3, %v167_v44, %v174_v41 }
  0x89   :  { %v187_v46 = vsel %vm186_vm4, %v185_v45, %v183_v43 }
  0x8a   :  { %188 = vst [vmem:[#allocation7] sm:$0x7] %v187_v46 }
  0x8b   :  { %281 = shalt.err (!%p278_p6)
}
  0x8c   :  { %s282_s24 = scalar_lea.hbm %s380_s4, 64 }
  0x8d   :  { %p283_p7 = scmp.ne.s32.totalorder %s380_s4, %s282_s24  ;;  %p286_p8 = scmp.lt.u32.totalorder %s282_s24, %s380_s4 }
  0x8f   :  { %p288_p9 = pnand %p286_p8, %p283_p7 }
  0x91   :  { %291 = shalt.err (!%p288_p9)
}
  0x92   :  { %198 = dma.vmem_to_hbm [thread:$0]  %s196_s21, 64, %s380_s4, [#allocation4]  }
  0x93   :  { %296 = dma.done.wait [#allocation4], 64  }
  0x94   :  { %297 = vsyncadd [#allocation4], 4294967232 }
  0x95   :  { %202 = vsyncpa [#allocation3], 1 }
  0x96   :  { %203 = vsyncpa [#allocation6], 1 }
  0x97   :  { %204 = vsyncpa [#allocation4], 1 }

</bundles_post_ra>
